<compile_context>
chip_gen: v7x
topology: tpu7x:2x2x1
jax: 0.10.0
libtpu: 0.0.40
codegen_flags: <defaults>
</compile_context>

<pallas_src>
import jax
import jax.numpy as jnp
from jax.experimental import pallas as pl
from jax.experimental.pallas import tpu as pltpu


def _fused_identity_kernel(x_ref, o_ref):
    # Fused fold('b c d h w -> (b d) c h w') -> aug -> unfold.  The two rearranges
    # cancel exactly, and the base-class aug is the identity, so the fused op is a
    # pure elementwise copy of the VMEM tile.  A subclass with a real per-slice 2-D
    # aug would apply it here (and should use the (1, C, D, H, W) fallback tiling so
    # whole (H, W) planes live in one block).
    o_ref[...] = x_ref[...]


def _pick_lane_dim(n, itemsize, max_lane_bytes=32 * 1024):
    """Largest power-of-two multiple of 128 dividing n, with row bytes <= max_lane_bytes."""
    if n % 128 != 0:
        return None
    lane = 128
    while n % (lane * 2) == 0 and (lane * 2) * itemsize <= max_lane_bytes:
        lane *= 2
    return lane


def _pick_row_block(rows, lane, itemsize, max_block_bytes=4 * 1024 * 1024):
    """Row-block size: whole rows if it fits the VMEM budget, else a multiple-of-8 divisor."""
    if rows * lane * itemsize <= max_block_bytes:
        return rows
    cap = max(8, max_block_bytes // (lane * itemsize))
    best = None
    for d in range(8, min(rows, cap) + 1, 8):
        if rows % d == 0:
            best = d
    # If no multiple-of-8 divisor fits the budget, fall back to the full row extent
    # (block dim == full array dim is always layout-legal; VMEM budget is advisory).
    return best if best is not None else rows


def base_2d_to_3d(x, *, identity_shortcut=False):
    """Pallas implementation of Base2dTo3d.forward (aug = identity).

    With an identity aug the forward is mathematically the identity; pass
    identity_shortcut=True to skip the kernel (and all HBM traffic) entirely.
    The default path runs the fused copy kernel so subclasses can drop an aug in.
    """
    assert x.ndim == 5, "len of x.shape should be 5, i.e., B,C,D,H,W"
    if identity_shortcut:
        return x

    B, C, D, H, W = x.shape
    n_per_batch = C * D * H * W
    itemsize = jnp.dtype(x.dtype).itemsize
    lane = _pick_lane_dim(n_per_batch, itemsize)

    if lane is not None:
        # Lane-dense path: flatten each batch volume to (R, L), L a multiple of 128.
        rows = n_per_batch // lane
        rb = _pick_row_block(rows, lane, itemsize)
        grid = (B, rows // rb)
        x2 = x.reshape(B, rows, lane)
        y2 = pl.pallas_call(
            _fused_identity_kernel,
            out_shape=jax.ShapeDtypeStruct((B, rows, lane), x.dtype),
            grid=grid,
            in_specs=[pl.BlockSpec((1, rb, lane), lambda b, r: (b, r, 0))],
            out_specs=pl.BlockSpec((1, rb, lane), lambda b, r: (b, r, 0)),
            compiler_params=pltpu.CompilerParams(
                dimension_semantics=("parallel", "parallel")
            ),
        )(x2)
        return y2.reshape(B, C, D, H, W)

    # Fallback path (C*D*H*W not a multiple of 128): one (C, D, H, W) block per batch
    # element; last two block dims equal the full (H, W) so the layout is legal, and
    # whole 2-D slices stay intact inside a block for a future real aug.
    return pl.pallas_call(
        _fused_identity_kernel,
        out_shape=jax.ShapeDtypeStruct((B, C, D, H, W), x.dtype),
        grid=(B,),
        in_specs=[pl.BlockSpec((1, C, D, H, W), lambda b: (b, 0, 0, 0, 0))],
        out_specs=pl.BlockSpec((1, C, D, H, W), lambda b: (b, 0, 0, 0, 0)),
        compiler_params=pltpu.CompilerParams(dimension_semantics=("parallel",)),
    )(x)


if __name__ == "__main__":
    key = jax.random.PRNGKey(0)
    B, C, D, H, W = 2, 4, 8, 16, 16
    x = jax.random.normal(key, (B, C, D, H, W), dtype=jnp.float32)

    out = jax.block_until_ready(base_2d_to_3d(x))

    # Reference semantics in plain JAX (einops rearrange equivalents, identity aug).
    ref4d = jnp.transpose(x, (0, 2, 1, 3, 4)).reshape(B * D, C, H, W)
    ref5d = jnp.transpose(ref4d.reshape(B, D, C, H, W), (0, 2, 1, 3, 4))

    assert out.shape == (B, C, D, H, W)
    assert out.dtype == x.dtype
    assert jnp.array_equal(out, ref5d)
    assert jnp.array_equal(out, x)  # identity aug => forward is an identity round-trip

    # Also exercise the non-lane-dense fallback path (per-batch volume not % 128).
    x2 = jax.random.normal(jax.random.PRNGKey(1), (2, 1, 3, 28, 28), dtype=jnp.float32)
    out2 = jax.block_until_ready(base_2d_to_3d(x2))
    assert jnp.array_equal(out2, x2)

    # Identity shortcut path (zero HBM traffic).
    assert jnp.array_equal(base_2d_to_3d(x, identity_shortcut=True), x)

    print("KERNEL_OK")
</pallas_src>

<mosaic_0001>
module attributes {stable_mosaic.version = 11 : i64} {
  func.func @_fused_identity_kernel(%arg0: i32, %arg1: i32, %arg2: memref<1x1x8192xf32, #tpu.memory_space<vmem>>, %arg3: memref<1x1x8192xf32, #tpu.memory_space<vmem>>) attributes {dimension_semantics = [#tpu.dimension_semantics<parallel>, #tpu.dimension_semantics<parallel>], iteration_bounds = array<i64: 2, 1>, scalar_prefetch = 0 : i64, scratch_operands = 0 : i64, tpu.core_type = #tpu.core_type<tc>, window_params = [{transform_indices = @transform_0, window_bounds = array<i64: 1, 1, 8192>}, {transform_indices = @transform_1, window_bounds = array<i64: 1, 1, 8192>}]} {
    %c0 = arith.constant 0 : index
    %c0_0 = arith.constant 0 : index
    %c0_1 = arith.constant 0 : index
    %0 = vector.load %arg2[%c0, %c0_0, %c0_1] : memref<1x1x8192xf32, #tpu.memory_space<vmem>>, vector<1x1x8192xf32>
    %c0_2 = arith.constant 0 : index
    %c0_3 = arith.constant 0 : index
    %c0_4 = arith.constant 0 : index
    %1 = vector.load %arg3[%c0_2, %c0_3, %c0_4] : memref<1x1x8192xf32, #tpu.memory_space<vmem>>, vector<1x1x8192xf32>
    tpu.vector_store %arg3[%c0_2, %c0_3, %c0_4], %0 {strides = array<i32>} : memref<1x1x8192xf32, #tpu.memory_space<vmem>>, vector<1x1x8192xf32>,
    return
  }
  func.func @transform_0(%arg0: i32, %arg1: i32) -> (i32, i32, i32) {
    %c0_i32 = arith.constant 0 : i32
    %c0_i32_0 = arith.constant 0 : i32
    return %arg0, %arg1, %c0_i32 : i32, i32, i32
  }
  func.func @transform_1(%arg0: i32, %arg1: i32) -> (i32, i32, i32) {
    %c0_i32 = arith.constant 0 : i32
    %c0_i32_0 = arith.constant 0 : i32
    return %arg0, %arg1, %c0_i32 : i32, i32, i32
  }
}

</mosaic_0001>

<bundles_post_ra>
// kernel: tpu_custom_call.1
= control target key start
LH: loop header
LB: loop body
LE: loop exit
PB: predicated region body
PF: predicated region fallthrough
CT: control target
= control target key end

     0   :  { %6 = vsyncpa [#allocation3], 0  ;;  %s645_s0 = inlined_call_operand.hbm [shape: f32[2,1,8192], index: 0, kind: input, shape index: {}]   ;;  %s646_s1 = inlined_call_operand.hbm [shape: f32[2,1,8192], index: 1, kind: output, shape index: {}]  }
   0x1   :  { %8 = vsyncpa [#allocation3 + $0x1], 0 }
   0x2   :  { %9 = vsyncpa [#allocation4], 0 }
   0x3   :  { %11 = vsyncpa [#allocation4 + $0x1], 0  ;;  %s473_s6 = smov 0   ;;  %s475_s7 = smov 0  }
   0x4   :  { %s477_s8 = smov 0   ;;  %s479_s9 = smov 0  }
   0x5   :  { %s481_s10 = smov 0   ;;  %s483_s11 = smov 0  }
   0x6 LB: > { %s268_s12 = sadd.s32 4294967295, %s459_s11   ;;  %s269_s13 = sadd.s32 4294967294, %s459_s11   ;;  %s459_s11 = sphi %s483_s11, %s17_s11   ;;  %s455_s10 = sphi %s481_s10, %s662_s10   ;;  %s451_s9 = sphi %s479_s9, %s661_s9   ;;  %s447_s8 = sphi %s477_s8, %s660_s8   ;;  %s443_s7 = sphi %s475_s7, %s659_s7   ;;  %s439_s6 = sphi %s473_s6, %s658_s6  }
   0x7   : > { %s29_s14 = sadd.s32 1, %s455_s10  ;;  %s38_s15 = sadd.s32 1, %s447_s8 }
   0x8   : > { %p31_p0 = scmp.ge.s32.totalorder %s29_s14, 2  ;;  %p45_p1 = scmp.ne.s32.totalorder %s447_s8, %s443_s7 }
   0x9   : > { %p46_p2 = scmp.eq.s32.totalorder %s459_s11, 0  ;;  %p51_p3 = scmp.ne.s32.totalorder %s443_s7, %s439_s6 }
   0xa   : > { %s664_s14 = smov (%p31_p0, %s29_s14), 0  ;;  %p52_p5 = scmp.eq.s32.totalorder %s268_s12, 0 }
   0xb   : > { %p514_p4 = por %p46_p2, %p45_p1  ;;  %s33_s17 = ssub.s32 %s455_s10, %s664_s14 }
   0xc   : > { %p77_p6 = scmp.eq.s32.totalorder %s268_s12, 1  ;;  %p36_p7 = scmp.eq.s32.totalorder %s33_s17, 0 }
   0xd   : > { %p520_p8 = por %p52_p5, %p51_p3  ;;  %p83_p10 = scmp.eq.s32.totalorder %s269_s13, 1 }
   0xe   : > { %p524_p9 = por %p77_p6, %p45_p1  ;;  %p297_p13 = scmp.lt.s32.totalorder %s459_s11, 2 }
   0xf   : > { %s529_s20 = scalar_select %p36_p7, %s447_s8, %s38_s15  }
  0x10   : > { %s650_s19 = scalar_select %p524_p9, 1, 0 }
  0x11   : > { %p531_p11 = por %p83_p10, %p51_p3  ;;  %s103_s22 = sand.u32 1, %s447_s8  }
  0x12   : > { %s272_s23 = sshll.u32 %s103_s22, 6  ;;  %s283_s24 = sshll.u32 %s455_s10, 10 }
  0x13   : > { %s651_s21 = scalar_select %p531_p11, 1, 0 }
  0x14   : > { %s542_s27 = scalar_lea.hbm %s645_s0, %s283_s24  ;;  %s107_s28 = scalar_lea.vmem [#allocation2], %s272_s23 }
  0x15   : > { %s117_s29 = sshll.u32 %s107_s28, 4  ;;  %p548_p0 = pnand %p297_p13, %p514_p4  ;;  %s544_s29 = int_to_ptr.vmem [resolvable:$true] %s117_s29 }
  0x16   : > { %s104_s2 = scalar_lea.sflag [#allocation3], %s103_s22  ;;  %s347_s3 = scalar_lea.hbm %s542_s27, 1024 }
  0x17   : > { %p348_p3 = scmp.ne.s32.totalorder %s542_s27, %s347_s3  ;;  %p349_p5 = pneg %p548_p0 }
  0x18   : > { %s352_s12 = scalar_lea.hbm %s645_s0, 2048  ;;  %p353_p4 = scmp.lt.u32.totalorder %s542_s27, %s645_s0 }
  0x19   : > { %p350_p6 = pnand %p349_p5, %p348_p3  ;;  %p354_p10 = scmp.lt.u32.totalorder %s352_s12, %s347_s3 }
  0x1a   : > { %p356_p12 = scmp.lt.u32.totalorder %s347_s3, %s542_s27 }
  0x1b   : > { %p351_p7 = pneg %p350_p6  ;;  %p355_p13 = por %p354_p10, %p353_p4 }
  0x1d   : > { %p357_p1 = por %p356_p12, %p355_p13 }
  0x1f   : > { %p358_p2 = pnand %p357_p1, %p351_p7 }
  0x21   : > { %361 = shalt.err (!%p358_p2)
}
  0x22   : > { %s362_s16 = scalar_lea.vmem %s544_s29, 1024  ;;  %s461_s17 = smov [#allocation2]  }
  0x23   : > { %p363_p3 = scmp.ne.s32.totalorder %s544_s29, %s362_s16  ;;  %s367_s22 = sshll.u32 %s461_s17, 4  ;;  %s368_s22 = int_to_ptr.vmem [resolvable:$false] %s367_s22 }
  0x24   : > { %s369_s23 = scalar_lea.vmem %s368_s22, 2048  ;;  %p370_p9 = scmp.lt.s32.totalorder %s544_s29, %s368_s22 }
  0x25   : > { %p365_p6 = pnand %p363_p3, %p349_p5  ;;  %p371_p4 = scmp.lt.s32.totalorder %s369_s23, %s362_s16 }
  0x27   : > { %p366_p11 = pneg %p365_p6  ;;  %p372_p10 = por %p371_p4, %p370_p9 }
  0x29   : > { %p373_p12 = pnand %p372_p10, %p366_p11 }
  0x2b   : > { %376 = shalt.err (!%p373_p12)
}
  0x2c   : > { %292 = dma.hbm_to_vmem [thread:$0]  (!%p548_p0), %s542_s27, 1024, %s544_s29, %s104_s2  }
  0x2d   : > { %p653_p1 = scmp.lt.s32.totalorder %s459_s11, 3  ;;  %p654_p2 = scmp.ge.s32.totalorder %s459_s11, 1 }
  0x2f   : > { %p123_p5 = pnand %p654_p2, %p653_p1 }
  0x30   : > { %s584_s24 = sand.u32 (!%p123_p5), 1, %s443_s7  }
  0x31   : > { %126 = sbr.rel (%p123_p5) target bundleno = 83 (0x53), region = 24  ;;  %s276_s25 = sshll.u32 (!%p123_p5), %s584_s24, 6 }
  0x32   : > { %s129_s26 = scalar_lea.sflag (!%p123_p5), [#allocation3], %s584_s24  ;;  %s132_s28 = scalar_lea.vmem (!%p123_p5), [#allocation2], %s276_s25 }
  0x38   : > { %430 = dma.done.wait (%p520_p8), %s129_s26, 1024  }
  0x39   : > { %432 = vsyncadd (%p520_p8), %s129_s26, 4294966272  ;;  %s284_s27 = sshll.u32 %s451_s9, 10  ;;  %s150_s29 = scalar_lea.vmem [#allocation5], %s276_s25  ;;  %v151_v0 = vld [vmem:[%s132_s28] sm:$0xff]  ;;  %v152_v1 = vld [vmem:[%s132_s28 + $0x8] sm:$0xff] }
  0x3a   : > { %s184_s30 = sshll.u32 %s150_s29, 4  ;;  %v153_v2 = vld [vmem:[%s132_s28 + $0x10] sm:$0xff]  ;;  %159 = vst [vmem:[%s150_s29] sm:$0xff] %v151_v0  ;;  %160 = vst [vmem:[%s150_s29 + $0x8] sm:$0xff] %v152_v1  ;;  %v154_v3 = vld [vmem:[%s132_s28 + $0x18] sm:$0xff]  ;;  %s596_s18 = scalar_lea.hbm %s646_s1, %s284_s27  ;;  %s598_s30 = int_to_ptr.vmem [resolvable:$true] %s184_s30 }
  0x3b   : > { %161 = vst [vmem:[%s150_s29 + $0x10] sm:$0xff] %v153_v2  ;;  %v155_v4 = vld [vmem:[%s132_s28 + $0x20] sm:$0xff]  ;;  %v156_v5 = vld [vmem:[%s132_s28 + $0x28] sm:$0xff]  ;;  %162 = vst [vmem:[%s150_s29 + $0x18] sm:$0xff] %v154_v3  ;;  %s168_s9 = scalar_lea.sflag [#allocation4], %s584_s24  ;;  %s377_s4 = scalar_lea.vmem %s598_s30, 1024 }
  0x3c   : > { %163 = vst [vmem:[%s150_s29 + $0x20] sm:$0xff] %v155_v4  ;;  %164 = vst [vmem:[%s150_s29 + $0x28] sm:$0xff] %v156_v5  ;;  %v157_v6 = vld [vmem:[%s132_s28 + $0x30] sm:$0xff]  ;;  %v158_v7 = vld [vmem:[%s132_s28 + $0x38] sm:$0xff]  ;;  %p378_p8 = scmp.ne.s32.totalorder %s598_s30, %s377_s4  ;;  %p655_p9 = scmp.ne.s32.totalorder %s650_s19, 0 }
  0x3d   : > { %165 = vst [vmem:[%s150_s29 + $0x30] sm:$0xff] %v157_v6  ;;  %166 = vst [vmem:[%s150_s29 + $0x38] sm:$0xff] %v158_v7  ;;  %s462_s5 = smov [#allocation5]  }
  0x3e   : > { %p379_p11 = pnand %p378_p8, %p655_p9  ;;  %s381_s12 = sshll.u32 %s462_s5, 4  ;;  %s382_s12 = int_to_ptr.vmem [resolvable:$false] %s381_s12 }
  0x3f   : > { %s383_s13 = scalar_lea.vmem %s382_s12, 2048  ;;  %p384_p7 = scmp.lt.s32.totalorder %s598_s30, %s382_s12 }
  0x40   : > { %p380_p0 = pneg %p379_p11  ;;  %p385_p13 = scmp.lt.s32.totalorder %s383_s13, %s377_s4 }
  0x42   : > { %p386_p3 = por %p385_p13, %p384_p7 }
  0x44   : > { %p387_p6 = pnand %p386_p3, %p380_p0 }
  0x46   : > { %390 = shalt.err (!%p387_p6)
}
  0x47   : > { %s391_s15 = scalar_lea.hbm %s596_s18, 1024  ;;  %s395_s22 = scalar_lea.hbm %s646_s1, 2048 }
  0x48   : > { %p392_p4 = scmp.ne.s32.totalorder %s596_s18, %s391_s15  ;;  %p396_p1 = scmp.lt.u32.totalorder %s596_s18, %s646_s1 }
  0x49   : > { %p397_p2 = scmp.lt.u32.totalorder %s395_s22, %s391_s15  ;;  %p399_p8 = scmp.lt.u32.totalorder %s391_s15, %s596_s18 }
  0x4a   : > { %p393_p10 = pnand %p392_p4, %p655_p9 }
  0x4b   : > { %p398_p5 = por %p397_p2, %p396_p1 }
  0x4c   : > { %p394_p12 = pneg %p393_p10 }
  0x4d   : > { %p400_p11 = por %p399_p8, %p398_p5 }
  0x4f   : > { %p401_p0 = pnand %p400_p11, %p394_p12 }
  0x51   : > { %404 = shalt.err (!%p401_p0)
}
  0x52   : > { %287 = dma.vmem_to_hbm [thread:$0]  (%p655_p9), %s598_s30, 1024, %s596_s18, %s168_s9  }
  0x53 PF: > { %s196_s25 = sand.u32 1, %s439_s6   ;;  %p656_p7 = scmp.ne.s32.totalorder %s651_s21, 0 }
  0x54   : > { %p657_p13 = scmp.ge.s32.totalorder %s459_s11, 2  ;;  %s197_s26 = scalar_lea.sflag [#allocation4], %s196_s25 }
  0x56   : > { %p294_p3 = pnand %p657_p13, %p656_p7 }
  0x58   : > { %434 = dma.done.wait (!%p294_p3), %s197_s26, 1024  }
  0x59   : > { %436 = vsyncadd (!%p294_p3), %s197_s26, 4294966272  ;;  %s17_s11 = sadd.s32 1, %s459_s11   ;;  %s658_s6 = smov %s443_s7 }
  0x5a   : > { %p14_p6 = scmp.ge.s32.totalorder %s17_s11, 4   ;;  %s659_s7 = smov %s447_s8 }
  0x5b   : > { %s660_s8 = smov %s529_s20  ;;  %s661_s9 = smov %s455_s10 }
  0x5c   : > { %s662_s10 = smov %s664_s14  ;;  %16 = sbr.rel (!%p14_p6) target bundleno = 6 (0x6), region = 69 }
  0x63   :  { %202 = vsyncpa [#allocation3], 1 }
  0x64   :  { %204 = vsyncpa [#allocation3 + $0x1], 1 }
  0x65   :  { %205 = vsyncpa [#allocation4], 1 }
  0x66   :  { %207 = vsyncpa [#allocation4 + $0x1], 1 }

</bundles_post_ra>
